<compile_context>
chip_gen: v5e
topology: v5e:2x2
jax: 0.10.0
libtpu: 0.0.40
codegen_flags: <defaults>
</compile_context>

<pallas_src>
import functools

import jax
import jax.numpy as jnp
from jax.experimental import pallas as pl
from jax.experimental.pallas import tpu as pltpu


def _round_up(x, m):
    return ((x + m - 1) // m) * m


def _vmem_capacity_bytes():
    """Per-TensorCore VMEM capacity; conservative (v7x, 64 MiB) fallback."""
    try:
        info = pltpu.get_tpu_info()
        cap = int(getattr(info, "vmem_capacity_bytes", 0))
        if cap > 0:
            return cap
    except Exception:
        pass
    return 64 << 20


def _off_kernel(fx_ref, fy_ref, w_ref, b_ref, o_ref, y_ref, *, n_chunks, cl):
    # fx_ref / o_ref: (TB, n_chunks*cl) lane-dense slab
    # fy_ref: (TB, cs)   w_ref: (cs, cl)   b_ref: (1, cl)   y_ref: (TB, cl) scratch
    #
    # Project once per batch tile (lane grid index 0). fy/w/b block indices are
    # lane-invariant, so no redundant DMA is issued on later lane steps.
    @pl.when(pl.program_id(1) == 0)
    def _():
        y32 = jnp.dot(fy_ref[...], w_ref[...], preferred_element_type=jnp.float32)
        y_ref[...] = (y32 + b_ref[...]).astype(y_ref.dtype)

    y = y_ref[...]
    if n_chunks <= 32:
        # Static lane-sliced adds: every slice is cl-aligned (a zero-cost ref view
        # when cl % 128 == 0); no broadcast-tiled intermediate is materialized.
        for r in range(n_chunks):
            lo = r * cl
            o_ref[:, lo:lo + cl] = fx_ref[:, lo:lo + cl] + y
    else:
        def body(r, carry):
            lo = pl.multiple_of(r * cl, cl)
            o_ref[:, pl.ds(lo, cl)] = fx_ref[:, pl.ds(lo, cl)] + y
            return carry
        jax.lax.fori_loop(0, n_chunks, body, 0)


def _choose_tiles(B, N, cl, cs, x_itemsize, y_itemsize,
                  target_tile_bytes, vmem_budget):
    """Pick (batch tile, lane tile, cl-chunks per lane tile)."""
    sublane = max(8, 32 // max(int(x_itemsize), 1))   # 8 for f32, 16 for bf16

    # --- lane tiling over the flattened N*cl row, in multiples of cl ---
    lane_chunks = N                                   # full row by default
    if cl % 128 == 0 and N > 1:
        feasible = [d for d in range(1, N + 1)
                    if N % d == 0 and d <= 32
                    and sublane * d * cl * x_itemsize <= target_tile_bytes]
        lane_chunks = max(feasible) if feasible else 1
    lane_tile = lane_chunks * cl
    lane_bytes = lane_tile * x_itemsize

    # --- batch tiling: hit the fx-tile target, then cap by total per-tile VMEM ---
    tb = (target_tile_bytes // max(lane_bytes, 1)) // sublane * sublane
    per_row = 4 * lane_bytes + 2 * cs * y_itemsize + cl * x_itemsize
    tb_cap = (vmem_budget // max(per_row, 1)) // sublane * sublane
    tb = min(tb, max(tb_cap, sublane))
    tb = min(max(tb, sublane), B)

    # Dual-TensorCore friendliness: prefer >= 4 batch grid steps (>= 2 per v7x core)
    # when the batch allows, while keeping tiles >= ~1 MiB.
    if pl.cdiv(B, tb) < 4:
        floor_rows = max(sublane,
                         _round_up(-(-(1 << 20) // max(lane_bytes, 1)), sublane))
        want = _round_up(max(-(-B // 4), sublane), sublane)
        cand = max(want, floor_rows)
        if cand < tb:
            tb = cand
    tb = min(tb, B)
    return tb, lane_tile, lane_chunks


def object_feature_fusioner(feature_x, feature_y, weight, bias, *,
                            block_b=None, block_lanes=None):
    """feature_x: (B, N, cl), feature_y: (B, cs), weight: (cs, cl), bias: (cl,).

    `weight` is stored transposed relative to PyTorch's nn.Linear.weight
    (which is (cl, cs)):  y = feature_y @ weight + bias.
    """
    B, N, cl = feature_x.shape
    cs = feature_y.shape[1]
    assert feature_y.shape == (B, cs), (feature_y.shape, (B, cs))
    assert weight.shape == (cs, cl), f"weight must be (cs, cl)={(cs, cl)}, got {weight.shape}"
    assert bias.shape == (cl,), (bias.shape, (cl,))

    x_itemsize = feature_x.dtype.itemsize
    y_itemsize = feature_y.dtype.itemsize

    cap = _vmem_capacity_bytes()                       # 128 MiB v5e/v6e, 64 MiB v7x
    target_tile_bytes = max(min(cap // 8, 12 << 20), 2 << 20)
    vmem_budget = cap // 2

    tb, lane_tile, lane_chunks = _choose_tiles(
        B, N, cl, cs, x_itemsize, y_itemsize, target_tile_bytes, vmem_budget)
    if block_b is not None:
        tb = block_b
    if block_lanes is not None:
        lane_tile = block_lanes
        lane_chunks = lane_tile // cl

    grid_b = pl.cdiv(B, tb)                            # partial last block is masked
    assert (N * cl) % lane_tile == 0
    grid_l = (N * cl) // lane_tile

    # Lane-dense layout: flatten (N, cl) -> N*cl so DMAs / stores are wide.
    fx2d = feature_x.reshape(B, N * cl)
    bias2d = bias.reshape(1, cl)

    # Explicit VMEM budget: fx in/out tiles (double-buffered) + fy tile (double-
    # buffered) + resident weight/bias + y scratch, 2x headroom, clamped to 75%
    # of this generation's physical VMEM.
    fx_tile_bytes = tb * lane_tile * x_itemsize
    est = (4 * fx_tile_bytes
           + 2 * tb * cs * y_itemsize
           + 2 * cs * cl * weight.dtype.itemsize
           + 2 * cl * bias.dtype.itemsize
           + tb * cl * x_itemsize)
    vmem_limit = int(min(max(2 * est, 16 << 20), (cap * 3) // 4))

    cost = pl.CostEstimate(
        flops=2 * B * cs * cl,
        bytes_accessed=(2 * B * N * cl * x_itemsize       # fx in + out stream
                        + B * cs * y_itemsize
                        + cs * cl * weight.dtype.itemsize
                        + cl * bias.dtype.itemsize),
        transcendentals=0)

    kernel = functools.partial(_off_kernel, n_chunks=lane_chunks, cl=cl)

    out2d = pl.pallas_call(
        kernel,
        out_shape=jax.ShapeDtypeStruct((B, N * cl), feature_x.dtype),
        grid_spec=pltpu.PrefetchScalarGridSpec(
            num_scalar_prefetch=0,
            grid=(grid_b, grid_l),
            in_specs=[
                pl.BlockSpec((tb, lane_tile), lambda i, j: (i, j)),   # feature_x slab
                pl.BlockSpec((tb, cs),        lambda i, j: (i, 0)),   # feature_y rows
                pl.BlockSpec((cs, cl),        lambda i, j: (0, 0)),   # weight (resident)
                pl.BlockSpec((1, cl),         lambda i, j: (0, 0)),   # bias   (resident)
            ],
            out_specs=pl.BlockSpec((tb, lane_tile), lambda i, j: (i, j)),
            scratch_shapes=[pltpu.VMEM((tb, cl), feature_x.dtype)],   # projected y
        ),
        compiler_params=pltpu.CompilerParams(
            dimension_semantics=("parallel", "arbitrary"),
            vmem_limit_bytes=vmem_limit,
        ),
        cost_estimate=cost,
    )(fx2d, feature_y, weight, bias2d)

    return out2d.reshape(B, N, cl)


if __name__ == "__main__":
    # Small but lane/sublane-friendly shapes matching the module defaults.
    B, N = 2, 8                 # batch, object/sequence count
    cl_dim, cs_dim = 128, 512   # nn.Linear(cs_dim=512, cl_dim=128)

    key = jax.random.PRNGKey(0)
    k_fx, k_fy, k_w, k_b = jax.random.split(key, 4)

    feature_x = jax.random.normal(k_fx, (B, N, cl_dim), dtype=jnp.float32)
    feature_y = jax.random.normal(k_fy, (B, cs_dim), dtype=jnp.float32)

    # Deterministic synthetic parameters for nn.Linear(cs_dim, cl_dim).
    # Stored transposed relative to PyTorch: (cs_dim, cl_dim).
    bound = 1.0 / (cs_dim ** 0.5)
    weight = jax.random.uniform(k_w, (cs_dim, cl_dim), jnp.float32, -bound, bound)
    bias = jax.random.uniform(k_b, (cl_dim,), jnp.float32, -bound, bound)

    out = object_feature_fusioner(feature_x, feature_y, weight, bias)
    out = jax.block_until_ready(out)

    # Pure-JAX reference.
    ref = feature_x + (feature_y @ weight + bias)[:, None, :]
    assert out.shape == (B, N, cl_dim)
    assert jnp.allclose(out, ref, atol=1e-5, rtol=1e-5), "mismatch vs reference"

    print("KERNEL_OK")
</pallas_src>

<mosaic_0001>
module attributes {stable_mosaic.version = 11 : i64} {
  func.func @_off_kernel(%arg0: i32, %arg1: i32, %arg2: memref<2x1024xf32, #tpu.memory_space<vmem>>, %arg3: memref<2x512xf32, #tpu.memory_space<vmem>>, %arg4: memref<512x128xf32, #tpu.memory_space<vmem>>, %arg5: memref<1x128xf32, #tpu.memory_space<vmem>>, %arg6: memref<2x1024xf32, #tpu.memory_space<vmem>>, %arg7: memref<2x128xf32, #tpu.memory_space<vmem>>) attributes {dimension_semantics = [#tpu.dimension_semantics<parallel>, #tpu.dimension_semantics<arbitrary>], iteration_bounds = array<i64: 1, 1>, scalar_prefetch = 0 : i64, scratch_operands = 1 : i64, tpu.core_type = #tpu.core_type<tc>, window_params = [{transform_indices = @transform_0, window_bounds = array<i64: 2, 1024>}, {transform_indices = @transform_1, window_bounds = array<i64: 2, 512>}, {pipeline_mode = #tpu.pipeline_mode<synchronous>, transform_indices = @transform_2, window_bounds = array<i64: 512, 128>}, {pipeline_mode = #tpu.pipeline_mode<synchronous>, transform_indices = @transform_3, window_bounds = array<i64: 1, 128>}, {transform_indices = @transform_4, window_bounds = array<i64: 2, 1024>}]} {
    %c0_i32 = arith.constant 0 : i32
    %0 = arith.cmpi eq, %arg1, %c0_i32 : i32
    %1 = arith.extui %0 : i1 to i32
    %c0_i32_0 = arith.constant 0 : i32
    %2 = arith.cmpi ne, %1, %c0_i32_0 : i32
    scf.if %2 {
      %c0_27 = arith.constant 0 : index
      %c0_28 = arith.constant 0 : index
      %28 = vector.load %arg3[%c0_27, %c0_28] : memref<2x512xf32, #tpu.memory_space<vmem>>, vector<2x512xf32>
      %c0_29 = arith.constant 0 : index
      %c0_30 = arith.constant 0 : index
      %29 = vector.load %arg4[%c0_29, %c0_30] : memref<512x128xf32, #tpu.memory_space<vmem>>, vector<512x128xf32>
      %cst = arith.constant dense<0.000000e+00> : vector<2x128xf32>
      %30 = tpu.matmul %28, %29, %cst {dimension_numbers = #tpu.dot_dimension_numbers<[1], [0], [0], [1], [0, 0, 1, 1], [], []>} : vector<2x512xf32>, vector<512x128xf32>, vector<2x128xf32> -> vector<2x128xf32>
      %c0_31 = arith.constant 0 : index
      %c0_32 = arith.constant 0 : index
      %31 = vector.load %arg5[%c0_31, %c0_32] : memref<1x128xf32, #tpu.memory_space<vmem>>, vector<1x128xf32>
      %32 = vector.broadcast %31 : vector<1x128xf32> to vector<2x128xf32>
      %33 = arith.addf %30, %32 : vector<2x128xf32>
      %c0_33 = arith.constant 0 : index
      %c0_34 = arith.constant 0 : index
      %34 = vector.load %arg7[%c0_33, %c0_34] : memref<2x128xf32, #tpu.memory_space<vmem>>, vector<2x128xf32>
      tpu.vector_store %arg7[%c0_33, %c0_34], %33 {strides = array<i32>} : memref<2x128xf32, #tpu.memory_space<vmem>>, vector<2x128xf32>,
    } else {
    }
    %c0 = arith.constant 0 : index
    %c0_1 = arith.constant 0 : index
    %3 = vector.load %arg7[%c0, %c0_1] : memref<2x128xf32, #tpu.memory_space<vmem>>, vector<2x128xf32>
    %c0_2 = arith.constant 0 : index
    %c0_3 = arith.constant 0 : index
    %4 = vector.load %arg2[%c0_2, %c0_3] : memref<2x1024xf32, #tpu.memory_space<vmem>>, vector<2x128xf32>
    %5 = arith.addf %4, %3 : vector<2x128xf32>
    %c0_4 = arith.constant 0 : index
    %c0_5 = arith.constant 0 : index
    %6 = vector.load %arg6[%c0_4, %c0_5] : memref<2x1024xf32, #tpu.memory_space<vmem>>, vector<2x128xf32>
    tpu.vector_store %arg6[%c0_4, %c0_5], %5 {strides = array<i32>} : memref<2x1024xf32, #tpu.memory_space<vmem>>, vector<2x128xf32>,
    %c0_6 = arith.constant 0 : index
    %c128 = arith.constant 128 : index
    %7 = vector.load %arg2[%c0_6, %c128] : memref<2x1024xf32, #tpu.memory_space<vmem>>, vector<2x128xf32>
    %8 = arith.addf %7, %3 : vector<2x128xf32>
    %c0_7 = arith.constant 0 : index
    %c128_8 = arith.constant 128 : index
    %9 = vector.load %arg6[%c0_7, %c128_8] : memref<2x1024xf32, #tpu.memory_space<vmem>>, vector<2x128xf32>
    tpu.vector_store %arg6[%c0_7, %c128_8], %8 {strides = array<i32>} : memref<2x1024xf32, #tpu.memory_space<vmem>>, vector<2x128xf32>,
    %c0_9 = arith.constant 0 : index
    %c256 = arith.constant 256 : index
    %10 = vector.load %arg2[%c0_9, %c256] : memref<2x1024xf32, #tpu.memory_space<vmem>>, vector<2x128xf32>
    %11 = arith.addf %10, %3 : vector<2x128xf32>
    %c0_10 = arith.constant 0 : index
    %c256_11 = arith.constant 256 : index
    %12 = vector.load %arg6[%c0_10, %c256_11] : memref<2x1024xf32, #tpu.memory_space<vmem>>, vector<2x128xf32>
    tpu.vector_store %arg6[%c0_10, %c256_11], %11 {strides = array<i32>} : memref<2x1024xf32, #tpu.memory_space<vmem>>, vector<2x128xf32>,
    %c0_12 = arith.constant 0 : index
    %c384 = arith.constant 384 : index
    %13 = vector.load %arg2[%c0_12, %c384] : memref<2x1024xf32, #tpu.memory_space<vmem>>, vector<2x128xf32>
    %14 = arith.addf %13, %3 : vector<2x128xf32>
    %c0_13 = arith.constant 0 : index
    %c384_14 = arith.constant 384 : index
    %15 = vector.load %arg6[%c0_13, %c384_14] : memref<2x1024xf32, #tpu.memory_space<vmem>>, vector<2x128xf32>
    tpu.vector_store %arg6[%c0_13, %c384_14], %14 {strides = array<i32>} : memref<2x1024xf32, #tpu.memory_space<vmem>>, vector<2x128xf32>,
    %c0_15 = arith.constant 0 : index
    %c512 = arith.constant 512 : index
    %16 = vector.load %arg2[%c0_15, %c512] : memref<2x1024xf32, #tpu.memory_space<vmem>>, vector<2x128xf32>
    %17 = arith.addf %16, %3 : vector<2x128xf32>
    %c0_16 = arith.constant 0 : index
    %c512_17 = arith.constant 512 : index
    %18 = vector.load %arg6[%c0_16, %c512_17] : memref<2x1024xf32, #tpu.memory_space<vmem>>, vector<2x128xf32>
    tpu.vector_store %arg6[%c0_16, %c512_17], %17 {strides = array<i32>} : memref<2x1024xf32, #tpu.memory_space<vmem>>, vector<2x128xf32>,
    %c0_18 = arith.constant 0 : index
    %c640 = arith.constant 640 : index
    %19 = vector.load %arg2[%c0_18, %c640] : memref<2x1024xf32, #tpu.memory_space<vmem>>, vector<2x128xf32>
    %20 = arith.addf %19, %3 : vector<2x128xf32>
    %c0_19 = arith.constant 0 : index
    %c640_20 = arith.constant 640 : index
    %21 = vector.load %arg6[%c0_19, %c640_20] : memref<2x1024xf32, #tpu.memory_space<vmem>>, vector<2x128xf32>
    tpu.vector_store %arg6[%c0_19, %c640_20], %20 {strides = array<i32>} : memref<2x1024xf32, #tpu.memory_space<vmem>>, vector<2x128xf32>,
    %c0_21 = arith.constant 0 : index
    %c768 = arith.constant 768 : index
    %22 = vector.load %arg2[%c0_21, %c768] : memref<2x1024xf32, #tpu.memory_space<vmem>>, vector<2x128xf32>
    %23 = arith.addf %22, %3 : vector<2x128xf32>
    %c0_22 = arith.constant 0 : index
    %c768_23 = arith.constant 768 : index
    %24 = vector.load %arg6[%c0_22, %c768_23] : memref<2x1024xf32, #tpu.memory_space<vmem>>, vector<2x128xf32>
    tpu.vector_store %arg6[%c0_22, %c768_23], %23 {strides = array<i32>} : memref<2x1024xf32, #tpu.memory_space<vmem>>, vector<2x128xf32>,
    %c0_24 = arith.constant 0 : index
    %c896 = arith.constant 896 : index
    %25 = vector.load %arg2[%c0_24, %c896] : memref<2x1024xf32, #tpu.memory_space<vmem>>, vector<2x128xf32>
    %26 = arith.addf %25, %3 : vector<2x128xf32>
    %c0_25 = arith.constant 0 : index
    %c896_26 = arith.constant 896 : index
    %27 = vector.load %arg6[%c0_25, %c896_26] : memref<2x1024xf32, #tpu.memory_space<vmem>>, vector<2x128xf32>
    tpu.vector_store %arg6[%c0_25, %c896_26], %26 {strides = array<i32>} : memref<2x1024xf32, #tpu.memory_space<vmem>>, vector<2x128xf32>,
    return
  }
  func.func @transform_0(%arg0: i32, %arg1: i32) -> (i32, i32) {
    %c0_i32 = arith.constant 0 : i32
    return %arg0, %arg1 : i32, i32
  }
  func.func @transform_1(%arg0: i32, %arg1: i32) -> (i32, i32) {
    %c0_i32 = arith.constant 0 : i32
    %c0_i32_0 = arith.constant 0 : i32
    return %arg0, %c0_i32 : i32, i32
  }
  func.func @transform_2(%arg0: i32, %arg1: i32) -> (i32, i32) {
    %c0_i32 = arith.constant 0 : i32
    %c0_i32_0 = arith.constant 0 : i32
    %c0_i32_1 = arith.constant 0 : i32
    return %c0_i32, %c0_i32_0 : i32, i32
  }
  func.func @transform_3(%arg0: i32, %arg1: i32) -> (i32, i32) {
    %c0_i32 = arith.constant 0 : i32
    %c0_i32_0 = arith.constant 0 : i32
    %c0_i32_1 = arith.constant 0 : i32
    return %c0_i32, %c0_i32_0 : i32, i32
  }
  func.func @transform_4(%arg0: i32, %arg1: i32) -> (i32, i32) {
    %c0_i32 = arith.constant 0 : i32
    return %arg0, %arg1 : i32, i32
  }
}

</mosaic_0001>

<bundles_post_ra>
// kernel: tpu_custom_call.1
= control target key start
LH: loop header
LB: loop body
LE: loop exit
PB: predicated region body
PF: predicated region fallthrough
CT: control target
= control target key end

     0   :  { %9 = vsyncpa [#allocation4], 0  ;;  %s423_s0 = inlined_call_operand.hbm [shape: f32[2,1024], index: 0, kind: input, shape index: {}]   ;;  %s424_s1 = inlined_call_operand.hbm [shape: f32[2,512], index: 1, kind: input, shape index: {}]   ;;  %s425_s2 = inlined_call_operand.hbm [shape: f32[512,128], index: 2, kind: input, shape index: {}]   ;;  %s426_s3 = inlined_call_operand.vmem [shape: f32[1,128], index: 3, kind: input, shape index: {}]   ;;  %s427_s4 = inlined_call_operand.hbm [shape: f32[2,1024], index: 4, kind: output, shape index: {}]  }
   0x1   :  { %10 = vsyncpa [#allocation7], 0  ;;  %s28_s17 = sshll.u32 %s424_s1, 4  ;;  %s29_s17 = int_to_ptr.hbm [resolvable:$true] %s28_s17 }
   0x2   :  { %11 = vsyncpa [#allocation5], 0  ;;  %s377_s18 = smov [#allocation6]   ;;  %s17_s22 = sshll.u32 %s423_s0, 4  ;;  %s18_s22 = int_to_ptr.hbm [resolvable:$true] %s17_s22 }
   0x3   :  { %s30_s19 = sshll.u32 %s377_s18, 4  ;;  %s378_s23 = smov [#allocation3]   ;;  %s31_s19 = int_to_ptr.vmem [resolvable:$true] %s30_s19 }
   0x4   :  { %33 = dma.hbm_to_vmem [thread:$0]  %s29_s17, 128, %s31_s19, [#allocation7]  }
   0x5   :  { %s19_s24 = sshll.u32 %s378_s23, 4  ;;  %s38_s27 = sshll.u32 %s425_s2, 4  ;;  %s20_s24 = int_to_ptr.vmem [resolvable:$true] %s19_s24  ;;  %s39_s27 = int_to_ptr.hbm [resolvable:$true] %s38_s27 }
   0x6   :  { %22 = dma.hbm_to_vmem [thread:$0]  %s18_s22, 256, %s20_s24, [#allocation4]  }
   0x7   :  { %s379_s1 = smov [#allocation8]   ;;  %s380_s29 = smov 128  }
   0x8   :  { %s40_s28 = sshll.u32 %s379_s1, 4  ;;  %s381_s30 = smov 8   ;;  %s41_s28 = int_to_ptr.vmem [resolvable:$true] %s40_s28 }
   0x9   :  { %46 = dma.hbm_to_vmem [thread:$0]  %s39_s27, 8192, %s41_s28, [#allocation7], %s380_s29, %s380_s29, %s381_s30  }
   0xa   :  { %371 = dma.done.wait [#allocation4], 256  }
   0xb   :  { %372 = vsyncadd [#allocation4], 4294967040 }
   0xc   :  { %373 = dma.done.wait [#allocation7], 8320  }
   0xd   :  { %374 = vsyncadd [#allocation7], 4294958976  ;;  %v113_v0 = vld [vmem:[#allocation8 + $0x178] sm:$0xff]  ;;  %v112_v2 = vld [vmem:[#allocation8 + $0x170] sm:$0xff]  ;;  %s257_s8 = sshll.u32 %s427_s4, 4  ;;  %s258_s8 = int_to_ptr.hbm [resolvable:$true] %s257_s8 }
   0xe   :  { %v81_v1 = vld [vmem:[#allocation8 + $0x78] sm:$0xff]  ;;  %184 = vmatpush.msra.mxu2 %v113_v0  ;;  %v80_v4 = vld [vmem:[#allocation8 + $0x70] sm:$0xff]  ;;  %v111_v6 = vld [vmem:[#allocation8 + $0x168] sm:$0xff] }
   0xf   :  { %144 = vmatpush.msra.mxu0 %v81_v1  ;;  %v129_v3 = vld [vmem:[#allocation8 + $0x1f8] sm:$0xff]  ;;  %v128_v7 = vld [vmem:[#allocation8 + $0x1f0] sm:$0xff]  ;;  %v79_v8 = vld [vmem:[#allocation8 + $0x68] sm:$0xff] }
  0x10   :  { %v97_v5 = vld [vmem:[#allocation8 + $0xf8] sm:$0xff]  ;;  %204 = vmatpush.msra.mxu3 %v129_v3  ;;  %185 = vmatpush.msra.mxu2 %v112_v2  ;;  %v96_v9 = vld [vmem:[#allocation8 + $0xf0] sm:$0xff]  ;;  %v127_v10 = vld [vmem:[#allocation8 + $0x1e8] sm:$0xff] }
  0x11   :  { %164 = vmatpush.msra.mxu1 %v97_v5  ;;  %145 = vmatpush.msra.mxu0 %v80_v4  ;;  %v110_v11 = vld [vmem:[#allocation8 + $0x160] sm:$0xff]  ;;  %v95_v13 = vld [vmem:[#allocation8 + $0xe8] sm:$0xff]  ;;  %v109_v16 = vld [vmem:[#allocation8 + $0x158] sm:$0xff] }
  0x12   :  { %205 = vmatpush.msra.mxu3 %v128_v7  ;;  %v78_v12 = vld [vmem:[#allocation8 + $0x60] sm:$0xff]  ;;  %186 = vmatpush.msra.mxu2 %v111_v6  ;;  %v77_v17 = vld [vmem:[#allocation8 + $0x58] sm:$0xff]  ;;  %v108_v20 = vld [vmem:[#allocation8 + $0x150] sm:$0xff] }
  0x13   :  { %165 = vmatpush.msra.mxu1 %v96_v9  ;;  %146 = vmatpush.msra.mxu0 %v79_v8  ;;  %v126_v14 = vld [vmem:[#allocation8 + $0x1e0] sm:$0xff]  ;;  %v125_v18 = vld [vmem:[#allocation8 + $0x1d8] sm:$0xff]  ;;  %v76_v21 = vld [vmem:[#allocation8 + $0x50] sm:$0xff] }
  0x14   :  { %v94_v15 = vld [vmem:[#allocation8 + $0xe0] sm:$0xff]  ;;  %206 = vmatpush.msra.mxu3 %v127_v10  ;;  %187 = vmatpush.msra.mxu2 %v110_v11  ;;  %v93_v19 = vld [vmem:[#allocation8 + $0xd8] sm:$0xff]  ;;  %v124_v22 = vld [vmem:[#allocation8 + $0x1d0] sm:$0xff] }
  0x15   :  { %166 = vmatpush.msra.mxu1 %v95_v13  ;;  %147 = vmatpush.msra.mxu0 %v78_v12  ;;  %v92_v23 = vld [vmem:[#allocation8 + $0xd0] sm:$0xff]  ;;  %v107_v24 = vld [vmem:[#allocation8 + $0x148] sm:$0xff]  ;;  %v106_v28 = vld [vmem:[#allocation8 + $0x140] sm:$0xff] }
  0x16   :  { %207 = vmatpush.msra.mxu3 %v126_v14  ;;  %188 = vmatpush.msra.mxu2 %v109_v16  ;;  %v75_v25 = vld [vmem:[#allocation8 + $0x48] sm:$0xff]  ;;  %v74_v29 = vld [vmem:[#allocation8 + $0x40] sm:$0xff]  ;;  %v105_v32 = vld [vmem:[#allocation8 + $0x138] sm:$0xff] }
  0x17   :  { %167 = vmatpush.msra.mxu1 %v94_v15  ;;  %148 = vmatpush.msra.mxu0 %v77_v17  ;;  %v123_v26 = vld [vmem:[#allocation8 + $0x1c8] sm:$0xff]  ;;  %v122_v30 = vld [vmem:[#allocation8 + $0x1c0] sm:$0xff]  ;;  %v73_v33 = vld [vmem:[#allocation8 + $0x38] sm:$0xff] }
  0x18   :  { %208 = vmatpush.msra.mxu3 %v125_v18  ;;  %189 = vmatpush.msra.mxu2 %v108_v20  ;;  %v91_v27 = vld [vmem:[#allocation8 + $0xc8] sm:$0xff]  ;;  %v90_v31 = vld [vmem:[#allocation8 + $0xc0] sm:$0xff]  ;;  %v121_v34 = vld [vmem:[#allocation8 + $0x1b8] sm:$0xff] }
  0x19   :  { %168 = vmatpush.msra.mxu1 %v93_v19  ;;  %149 = vmatpush.msra.mxu0 %v76_v21  ;;  %v89_v35 = vld [vmem:[#allocation8 + $0xb8] sm:$0xff]  ;;  %v104_v36 = vld [vmem:[#allocation8 + $0x130] sm:$0xff]  ;;  %v103_v40 = vld [vmem:[#allocation8 + $0x128] sm:$0xff] }
  0x1a   :  { %209 = vmatpush.msra.mxu3 %v124_v22  ;;  %190 = vmatpush.msra.mxu2 %v107_v24  ;;  %v72_v37 = vld [vmem:[#allocation8 + $0x30] sm:$0xff]  ;;  %v71_v41 = vld [vmem:[#allocation8 + $0x28] sm:$0xff]  ;;  %v102_v44 = vld [vmem:[#allocation8 + $0x120] sm:$0xff] }
  0x1b   :  { %169 = vmatpush.msra.mxu1 %v92_v23  ;;  %150 = vmatpush.msra.mxu0 %v75_v25  ;;  %v120_v38 = vld [vmem:[#allocation8 + $0x1b0] sm:$0xff]  ;;  %v119_v42 = vld [vmem:[#allocation8 + $0x1a8] sm:$0xff]  ;;  %v70_v45 = vld [vmem:[#allocation8 + $0x20] sm:$0xff] }
  0x1c   :  { %210 = vmatpush.msra.mxu3 %v123_v26  ;;  %191 = vmatpush.msra.mxu2 %v106_v28  ;;  %v88_v39 = vld [vmem:[#allocation8 + $0xb0] sm:$0xff]  ;;  %v87_v43 = vld [vmem:[#allocation8 + $0xa8] sm:$0xff]  ;;  %v65_v46 = vld [vmem:[#allocation6] sm:$0xff] }
  0x1d   :  { %170 = vmatpush.msra.mxu1 %v91_v27  ;;  %151 = vmatpush.msra.mxu0 %v74_v29  ;;  %v118_v47 = vld [vmem:[#allocation8 + $0x1a0] sm:$0xff]  ;;  %135 = vst [vmem:[#allocation1] ss:$4 sm:$0xff] %v65_v46  ;;  %v101_v49 = vld [vmem:[#allocation8 + $0x118] sm:$0xff]  ;;  %v100_v53 = vld [vmem:[#allocation8 + $0x110] sm:$0xff] }
  0x1e   :  { %211 = vmatpush.msra.mxu3 %v122_v30  ;;  %192 = vmatpush.msra.mxu2 %v105_v32  ;;  %v86_v48 = vld [vmem:[#allocation8 + $0xa0] sm:$0xff]  ;;  %v69_v50 = vld [vmem:[#allocation8 + $0x18] sm:$0xff]  ;;  %v68_v54 = vld [vmem:[#allocation8 + $0x10] sm:$0xff] }
  0x1f   :  { %171 = vmatpush.msra.mxu1 %v90_v31  ;;  %152 = vmatpush.msra.mxu0 %v73_v33  ;;  %v117_v51 = vld [vmem:[#allocation8 + $0x198] sm:$0xff]  ;;  %v116_v55 = vld [vmem:[#allocation8 + $0x190] sm:$0xff]  ;;  %v99_v57 = vld [vmem:[#allocation8 + $0x108] sm:$0xff] }
  0x20   :  { %212 = vmatpush.msra.mxu3 %v121_v34  ;;  %193 = vmatpush.msra.mxu2 %v104_v36  ;;  %v85_v52 = vld [vmem:[#allocation8 + $0x98] sm:$0xff]  ;;  %v84_v56 = vld [vmem:[#allocation8 + $0x90] sm:$0xff]  ;;  %v67_v58 = vld [vmem:[#allocation8 + $0x8] sm:$0xff] }
  0x21   :  { %172 = vmatpush.msra.mxu1 %v89_v35  ;;  %153 = vmatpush.msra.mxu0 %v72_v37  ;;  %v115_v59 = vld [vmem:[#allocation8 + $0x188] sm:$0xff]  ;;  %v98_v61 = vld [vmem:[#allocation8 + $0x100] sm:$0xff]  ;;  %v274_v5 = vld [vmem:[%s426_s3] ss:$0 sm:$0xff]  ;;  %s382_s3 = smov [#allocation9]  }
  0x22   :  { %213 = vmatpush.msra.mxu3 %v120_v38  ;;  %194 = vmatpush.msra.mxu2 %v103_v40  ;;  %v83_v60 = vld [vmem:[#allocation8 + $0x88] sm:$0xff]  ;;  %v66_v62 = vld [vmem:[#allocation8] sm:$0xff]  ;;  %v238_v19 = vld [vmem:[#allocation3 + $0x8] sm:$0x3]  ;;  %s255_s5 = sshll.u32 %s382_s3, 4  ;;  %s256_s5 = int_to_ptr.vmem [resolvable:$true] %s255_s5 }
  0x23   :  { %173 = vmatpush.msra.mxu1 %v88_v39  ;;  %154 = vmatpush.msra.mxu0 %v71_v41  ;;  %v114_v0 = vld [vmem:[#allocation8 + $0x180] sm:$0xff]  ;;  %v226_v14 = vld [vmem:[#allocation3] sm:$0x3]  ;;  %v229_v15 = vld [vmem:[#allocation3 + $0x2] sm:$0x3] }
  0x24   :  { %214 = vmatpush.msra.mxu3 %v119_v42  ;;  %195 = vmatpush.msra.mxu2 %v102_v44  ;;  %v138_v63 = vld.sshfl [vmem:[#allocation1 + $0x10] sm:$0xff pattern:$0x73625140]  ;;  %v136_v1 = vld.sshfl [vmem:[#allocation1] sm:$0xff pattern:$0x73625140] }
  0x25   :  { %174 = vmatpush.msra.mxu1 %v87_v43  ;;  %155 = vmatpush.msra.mxu0 %v70_v45  ;;  %v139_v2 = vld.sshfl [vmem:[#allocation1 + $0x18] sm:$0xff pattern:$0x73625140]  ;;  %v82_v3 = vld [vmem:[#allocation8 + $0x80] sm:$0xff]  ;;  %v232_v16 = vld [vmem:[#allocation3 + $0x4] sm:$0x3] }
  0x26   :  { %215 = vmatpush.msra.mxu3 %v118_v47  ;;  %196 = vmatpush.msra.mxu2 %v101_v49  ;;  %v137_v4 = vld.sshfl [vmem:[#allocation1 + $0x8] sm:$0xff pattern:$0x73625140]  ;;  %v235_v17 = vld [vmem:[#allocation3 + $0x6] sm:$0x3] }
  0x27   :  { %175 = vmatpush.msra.mxu1 %v86_v48  ;;  %156 = vmatpush.msra.mxu0 %v69_v50  ;;  %v241_v23 = vld [vmem:[#allocation3 + $0xa] sm:$0x3]  ;;  %v244_v25 = vld [vmem:[#allocation3 + $0xc] sm:$0x3]  ;;  %v247_v27 = vld [vmem:[#allocation3 + $0xe] sm:$0x3] }
  0x28   :  { %216 = vmatpush.msra.mxu3 %v117_v51  ;;  %197 = vmatpush.msra.mxu2 %v100_v53 }
  0x29   :  { %176 = vmatpush.msra.mxu1 %v85_v52  ;;  %157 = vmatpush.msra.mxu0 %v68_v54 }
  0x2a   :  { %217 = vmatpush.msra.mxu3 %v116_v55  ;;  %198 = vmatpush.msra.mxu2 %v99_v57 }
  0x2b   :  { %177 = vmatpush.msra.mxu1 %v84_v56  ;;  %158 = vmatpush.msra.mxu0 %v67_v58 }
  0x2c   :  { %218 = vmatpush.msra.mxu3 %v115_v59  ;;  %199 = vmatpush.msra.mxu2 %v98_v61 }
  0x2d   :  { %178 = vmatpush.msra.mxu1 %v83_v60  ;;  %159 = vmatpush.msra.mxu0 %v66_v62 }
  0x2e   :  { %200 = vmatmul.f32.vlgmr.msra.gmra.mxu2 %v138_v63  ;;  %219 = vmatpush.msra.mxu3 %v114_v0 }
  0x2f   :  { %160 = vmatmul.f32.vlgmr.msra.gmra.mxu0 %v136_v1  ;;  %220 = vmatmul.f32.vlgmr.msra.gmra.mxu3 %v139_v2 }
  0x30   :  { %179 = vmatpush.msra.mxu1 %v82_v3 }
  0x31   :  { %180 = vmatmul.f32.vlgmr.msra.gmra.mxu1 %v137_v4 }
  0xac   :  { %v161_v6 = vpop.f32.mrf.mxu0 }
  0xad   :  { %v162_v7 = vadd.f32 %v274_v5, %v161_v6 }
  0xae   :  { %v181_v8 = vpop.f32.mrf.mxu1 }
  0xaf   :  { %v182_v9 = vadd.f32 %v181_v8, %v162_v7 }
  0xb1   :  { %v201_v10 = vpop.f32.mrf.mxu2 }
  0xb2   :  { %v202_v11 = vadd.f32 %v201_v10, %v182_v9  ;;  %v221_v12 = vpop.f32.mrf.mxu3 }
  0xb4   :  { %v222_v13 = vadd.f32 %v221_v12, %v202_v11 }
  0xb6   :  { %224 = vst [vmem:[#allocation2] sm:$0x3] %v222_v13 }
  0xbd   :  { %v225_v18 = vld [vmem:[#allocation2] sm:$0x3] }
  0xbe   :  { %v227_v20 = vadd.f32 %v226_v14, %v225_v18  ;;  %v230_v21 = vadd.f32 %v229_v15, %v225_v18  ;;  %v233_v22 = vadd.f32 %v232_v16, %v225_v18  ;;  %v236_v24 = vadd.f32 %v235_v17, %v225_v18 }
  0xbf   :  { %v239_v26 = vadd.f32 %v238_v19, %v225_v18  ;;  %v242_v28 = vadd.f32 %v241_v23, %v225_v18  ;;  %v245_v29 = vadd.f32 %v244_v25, %v225_v18  ;;  %v248_v30 = vadd.f32 %v247_v27, %v225_v18 }
  0xc0   :  { %228 = vst [vmem:[#allocation9] sm:$0x3] %v227_v20 }
  0xc1   :  { %231 = vst [vmem:[#allocation9 + $0x2] sm:$0x3] %v230_v21 }
  0xc2   :  { %234 = vst [vmem:[#allocation9 + $0x4] sm:$0x3] %v233_v22 }
  0xc3   :  { %237 = vst [vmem:[#allocation9 + $0x6] sm:$0x3] %v236_v24 }
  0xc4   :  { %240 = vst [vmem:[#allocation9 + $0x8] sm:$0x3] %v239_v26 }
  0xc5   :  { %243 = vst [vmem:[#allocation9 + $0xa] sm:$0x3] %v242_v28 }
  0xc6   :  { %246 = vst [vmem:[#allocation9 + $0xc] sm:$0x3] %v245_v29 }
  0xc7   :  { %249 = vst [vmem:[#allocation9 + $0xe] sm:$0x3] %v248_v30 }
  0xc8   :  { %260 = dma.vmem_to_hbm [thread:$0]  %s256_s5, 256, %s258_s8, [#allocation5]  }
  0xc9   :  { %375 = dma.done.wait [#allocation5], 256  }
  0xca   :  { %376 = vsyncadd [#allocation5], 4294967040 }
  0xcb   :  { %265 = vsyncpa [#allocation4], 1 }
  0xcc   :  { %266 = vsyncpa [#allocation7], 1 }
  0xcd   :  { %267 = vsyncpa [#allocation5], 1 }

</bundles_post_ra>
